<compile_context>
chip_gen: v7x
topology: tpu7x:2x2x1
jax: 0.10.0
libtpu: 0.0.40
codegen_flags: <defaults>
</compile_context>

<pallas_src>
import functools

import jax
import jax.numpy as jnp
from jax import lax
from jax.experimental import pallas as pl
from jax.experimental.pallas import tpu as pltpu

LANE = 128


def _default_num_splits():
    """2 on chips with two TensorCores (v7x), else 1."""
    try:
        kind = jax.devices()[0].device_kind.lower()
    except Exception:  # pragma: no cover - defensive
        return 1
    return 2 if "7" in kind else 1


def _l1_partial_sum_kernel(pred_ref, tgt_ref, o_ref, acc_ref, *,
                           rows_valid, per_split):
    """Accumulates sum(|pred - tgt|) for one row-range split into o_ref."""
    c = pl.program_id(0)           # split (core) index  -- "parallel"
    i = pl.program_id(1)           # block index within the split -- "arbitrary"
    tm, lanes = acc_ref.shape

    @pl.when(i == 0)
    def _():
        acc_ref[...] = jnp.zeros_like(acc_ref)

    # abs-diff in the input dtype (bf16 stays bf16 on v6e/v7x); widen to f32
    # only at the accumulate.
    absdiff = jnp.abs(pred_ref[...] - tgt_ref[...]).astype(jnp.float32)

    # Row range this step was *meant* to cover (un-clamped).  Interior blocks
    # take the cheap unmasked path; only the ragged last block and any
    # clamped-duplicate block pay for the iota/compare/select.
    base_row = (c * per_split + i) * tm
    fully_valid = base_row + tm <= rows_valid

    @pl.when(fully_valid)
    def _():
        acc_ref[...] += absdiff

    @pl.when(jnp.logical_not(fully_valid))
    def _():
        row_ids = lax.broadcasted_iota(jnp.int32, (tm, lanes), 0)
        acc_ref[...] += jnp.where(base_row + row_ids < rows_valid, absdiff, 0.0)

    @pl.when(i == pl.num_programs(1) - 1)
    def _():
        # Lane-dense (1, 1, 128) partial store; cross-lane reduce + scale
        # happen once in the wrapper.
        o_ref[...] = jnp.sum(acc_ref[...], axis=0,
                             keepdims=True).reshape(o_ref.shape)


def mel_spectrogram_loss(initial_spec, pred_spec, *, tm=2048, num_splits=None):
    """45 * mean(|pred_spec - initial_spec|), reduction done in Pallas."""
    assert initial_spec.shape == pred_spec.shape
    assert initial_spec.dtype == pred_spec.dtype
    n = int(pred_spec.size)
    assert n > 0

    if num_splits is None:
        num_splits = _default_num_splits()

    a = pred_spec.reshape(-1)      # flattened views, no HBM copy
    b = initial_spec.reshape(-1)

    rows = n // LANE
    tail = n - rows * LANE

    # Lane-misaligned tail (< 128 elems) reduced in plain JAX -- avoids a full
    # jnp.pad copy of both inputs for misaligned element counts.
    tail_sum = None
    if tail:
        ta = a[rows * LANE:].astype(jnp.float32)
        tb = b[rows * LANE:].astype(jnp.float32)
        tail_sum = jnp.sum(jnp.abs(ta - tb))

    if rows == 0:
        # Whole input is smaller than one lane row; nothing for the kernel.
        return (45.0 / float(n)) * tail_sum

    a2 = a[: rows * LANE].reshape(rows, LANE)
    b2 = b[: rows * LANE].reshape(rows, LANE)

    # Largest tile that is a multiple of 8 sublanes and <= rows (rows < 8:
    # block equals the full array dim, which is allowed).
    if rows >= 8:
        tm = min(tm, (rows // 8) * 8)
    else:
        tm = rows

    nb_total = pl.cdiv(rows, tm)
    num_splits = max(1, min(num_splits, nb_total))   # never more splits than blocks
    per_split = pl.cdiv(nb_total, num_splits)

    def in_map(c, i):
        # Clamp so the DMA never indexes past the last real block; clamped
        # duplicates contribute nothing (masked by row index in-kernel).
        return (jnp.minimum(c * per_split + i, nb_total - 1), 0)

    kernel = functools.partial(
        _l1_partial_sum_kernel, rows_valid=rows, per_split=per_split)

    partials = pl.pallas_call(
        kernel,
        out_shape=jax.ShapeDtypeStruct((num_splits, 1, LANE), jnp.float32),
        grid_spec=pltpu.PrefetchScalarGridSpec(
            num_scalar_prefetch=0,
            grid=(num_splits, per_split),
            in_specs=[
                pl.BlockSpec((tm, LANE), in_map),
                pl.BlockSpec((tm, LANE), in_map),
            ],
            out_specs=pl.BlockSpec((1, 1, LANE), lambda c, i: (c, 0, 0)),
            scratch_shapes=[pltpu.VMEM((tm, LANE), jnp.float32)],
        ),
        compiler_params=pltpu.CompilerParams(
            dimension_semantics=("parallel", "arbitrary")),
    )(a2, b2)

    total = jnp.sum(partials)
    if tail_sum is not None:
        total = total + tail_sum
    return (45.0 / float(n)) * total


if __name__ == "__main__":
    key = jax.random.PRNGKey(0)
    k1, k2 = jax.random.split(key)

    # Small mel-spectrogram-like inputs: (batch, channels, n_mels, frames)
    shape = (2, 4, 16, 16)
    initial_spec = jax.random.normal(k1, shape, dtype=jnp.float32)
    pred_spec = jax.random.normal(k2, shape, dtype=jnp.float32)

    loss = mel_spectrogram_loss(initial_spec, pred_spec)
    loss = jax.block_until_ready(loss)

    # Reference check against plain JAX.
    ref = 45.0 * jnp.mean(jnp.abs(pred_spec - initial_spec))
    assert jnp.allclose(loss, ref, rtol=1e-5, atol=1e-5), (loss, ref)

    print("KERNEL_OK")
</pallas_src>

<mosaic_0001>
module attributes {stable_mosaic.version = 11 : i64} {
  func.func @_l1_partial_sum_kernel(%arg0: i32, %arg1: i32, %arg2: memref<16x128xf32, #tpu.memory_space<vmem>>, %arg3: memref<16x128xf32, #tpu.memory_space<vmem>>, %arg4: memref<1x1x128xf32, #tpu.memory_space<vmem>>, %arg5: memref<16x128xf32, #tpu.memory_space<vmem>>) attributes {dimension_semantics = [#tpu.dimension_semantics<parallel>, #tpu.dimension_semantics<arbitrary>], iteration_bounds = array<i64: 1, 1>, scalar_prefetch = 0 : i64, scratch_operands = 1 : i64, tpu.core_type = #tpu.core_type<tc>, window_params = [{transform_indices = @transform_0, window_bounds = array<i64: 16, 128>}, {transform_indices = @transform_1, window_bounds = array<i64: 16, 128>}, {transform_indices = @transform_2, window_bounds = array<i64: 1, 1, 128>}]} {
    %c0_i32 = arith.constant 0 : i32
    %0 = arith.cmpi eq, %arg1, %c0_i32 : i32
    %1 = arith.extui %0 : i1 to i32
    %c0_i32_0 = arith.constant 0 : i32
    %2 = arith.cmpi ne, %1, %c0_i32_0 : i32
    scf.if %2 {
      %cst = arith.constant 0.000000e+00 : f32
      %20 = vector.broadcast %cst : f32 to vector<16x128xf32>
      %c0_10 = arith.constant 0 : index
      %c0_11 = arith.constant 0 : index
      %21 = vector.load %arg5[%c0_10, %c0_11] : memref<16x128xf32, #tpu.memory_space<vmem>>, vector<16x128xf32>
      tpu.vector_store %arg5[%c0_10, %c0_11], %20 {strides = array<i32>} : memref<16x128xf32, #tpu.memory_space<vmem>>, vector<16x128xf32>,
    } else {
    }
    %c0 = arith.constant 0 : index
    %c0_1 = arith.constant 0 : index
    %3 = vector.load %arg2[%c0, %c0_1] : memref<16x128xf32, #tpu.memory_space<vmem>>, vector<16x128xf32>
    %c0_2 = arith.constant 0 : index
    %c0_3 = arith.constant 0 : index
    %4 = vector.load %arg3[%c0_2, %c0_3] : memref<16x128xf32, #tpu.memory_space<vmem>>, vector<16x128xf32>
    %5 = arith.subf %3, %4 : vector<16x128xf32>
    %6 = math.absf %5 : vector<16x128xf32>
    %c1_i32 = arith.constant 1 : i32
    %7 = arith.muli %arg0, %c1_i32 : i32
    %8 = arith.addi %7, %arg1 : i32
    %c16_i32 = arith.constant 16 : i32
    %9 = arith.muli %8, %c16_i32 : i32
    %c16_i32_4 = arith.constant 16 : i32
    %10 = arith.addi %9, %c16_i32_4 : i32
    %c16_i32_5 = arith.constant 16 : i32
    %11 = arith.cmpi sle, %10, %c16_i32_5 : i32
    %12 = arith.extui %11 : i1 to i32
    %c0_i32_6 = arith.constant 0 : i32
    %13 = arith.cmpi ne, %12, %c0_i32_6 : i32
    scf.if %13 {
      %c0_10 = arith.constant 0 : index
      %c0_11 = arith.constant 0 : index
      %20 = vector.load %arg5[%c0_10, %c0_11] : memref<16x128xf32, #tpu.memory_space<vmem>>, vector<16x128xf32>
      %21 = arith.addf %20, %6 : vector<16x128xf32>
      %c0_12 = arith.constant 0 : index
      %c0_13 = arith.constant 0 : index
      %22 = vector.load %arg5[%c0_12, %c0_13] : memref<16x128xf32, #tpu.memory_space<vmem>>, vector<16x128xf32>
      tpu.vector_store %arg5[%c0_12, %c0_13], %21 {strides = array<i32>} : memref<16x128xf32, #tpu.memory_space<vmem>>, vector<16x128xf32>,
    } else {
    }
    %true = arith.constant true
    %14 = arith.xori %11, %true : i1
    %15 = arith.extui %14 : i1 to i32
    %c0_i32_7 = arith.constant 0 : i32
    %16 = arith.cmpi ne, %15, %c0_i32_7 : i32
    scf.if %16 {
      %20 = tpu.iota {dimensions = array<i32: 0>} : vector<16x128xi32>
      %c0_10 = arith.constant 0 : index
      %c0_11 = arith.constant 0 : index
      %21 = vector.load %arg5[%c0_10, %c0_11] : memref<16x128xf32, #tpu.memory_space<vmem>>, vector<16x128xf32>
      %22 = vector.broadcast %9 : i32 to vector<16x128xi32>
      %23 = arith.addi %22, %20 : vector<16x128xi32>
      %c16_i32_12 = arith.constant 16 : i32
      %24 = vector.broadcast %c16_i32_12 : i32 to vector<16x128xi32>
      %25 = arith.cmpi slt, %23, %24 : vector<16x128xi32>
      %cst = arith.constant 0.000000e+00 : f32
      %26 = vector.broadcast %cst : f32 to vector<16x128xf32>
      %27 = arith.select %25, %6, %26 : vector<16x128xi1>, vector<16x128xf32>
      %28 = arith.addf %21, %27 : vector<16x128xf32>
      %c0_13 = arith.constant 0 : index
      %c0_14 = arith.constant 0 : index
      %29 = vector.load %arg5[%c0_13, %c0_14] : memref<16x128xf32, #tpu.memory_space<vmem>>, vector<16x128xf32>
      tpu.vector_store %arg5[%c0_13, %c0_14], %28 {strides = array<i32>} : memref<16x128xf32, #tpu.memory_space<vmem>>, vector<16x128xf32>,
    } else {
    }
    %c0_i32_8 = arith.constant 0 : i32
    %17 = arith.cmpi eq, %arg1, %c0_i32_8 : i32
    %18 = arith.extui %17 : i1 to i32
    %c0_i32_9 = arith.constant 0 : i32
    %19 = arith.cmpi ne, %18, %c0_i32_9 : i32
    scf.if %19 {
      %c0_10 = arith.constant 0 : index
      %c0_11 = arith.constant 0 : index
      %20 = vector.load %arg5[%c0_10, %c0_11] : memref<16x128xf32, #tpu.memory_space<vmem>>, vector<16x128xf32>
      %cst = arith.constant dense<0.000000e+00> : vector<128xf32>
      %21 = vector.multi_reduction <add>, %20, %cst [0] : vector<16x128xf32> to vector<128xf32>
      %22 = vector.shape_cast %21 : vector<128xf32> to vector<1x128xf32>
      %23 = vector.shape_cast %22 : vector<1x128xf32> to vector<1x1x128xf32>
      %c0_12 = arith.constant 0 : index
      %c0_13 = arith.constant 0 : index
      %c0_14 = arith.constant 0 : index
      %24 = vector.load %arg4[%c0_12, %c0_13, %c0_14] : memref<1x1x128xf32, #tpu.memory_space<vmem>>, vector<1x1x128xf32>
      tpu.vector_store %arg4[%c0_12, %c0_13, %c0_14], %23 {strides = array<i32>} : memref<1x1x128xf32, #tpu.memory_space<vmem>>, vector<1x1x128xf32>,
    } else {
    }
    return
  }
  func.func @transform_0(%arg0: i32, %arg1: i32) -> (i32, i32) {
    %c1_i32 = arith.constant 1 : i32
    %0 = arith.muli %arg0, %c1_i32 : i32
    %1 = arith.addi %0, %arg1 : i32
    %c0_i32 = arith.constant 0 : i32
    %2 = arith.minsi %1, %c0_i32 : i32
    %c0_i32_0 = arith.constant 0 : i32
    %c0_i32_1 = arith.constant 0 : i32
    return %2, %c0_i32_0 : i32, i32
  }
  func.func @transform_1(%arg0: i32, %arg1: i32) -> (i32, i32) {
    %c1_i32 = arith.constant 1 : i32
    %0 = arith.muli %arg0, %c1_i32 : i32
    %1 = arith.addi %0, %arg1 : i32
    %c0_i32 = arith.constant 0 : i32
    %2 = arith.minsi %1, %c0_i32 : i32
    %c0_i32_0 = arith.constant 0 : i32
    %c0_i32_1 = arith.constant 0 : i32
    return %2, %c0_i32_0 : i32, i32
  }
  func.func @transform_2(%arg0: i32, %arg1: i32) -> (i32, i32, i32) {
    %c0_i32 = arith.constant 0 : i32
    %c0_i32_0 = arith.constant 0 : i32
    %c0_i32_1 = arith.constant 0 : i32
    return %arg0, %c0_i32, %c0_i32_0 : i32, i32, i32
  }
}

</mosaic_0001>

<bundles_post_ra>
// kernel: tpu_custom_call.1
= control target key start
LH: loop header
LB: loop body
LE: loop exit
PB: predicated region body
PF: predicated region fallthrough
CT: control target
= control target key end

     0   :  { %7 = vsyncpa [#allocation4], 0  ;;  %s273_s0 = inlined_call_operand.hbm [shape: f32[16,128], index: 0, kind: input, shape index: {}]   ;;  %s274_s1 = inlined_call_operand.hbm [shape: f32[16,128], index: 1, kind: input, shape index: {}]   ;;  %s275_s2 = inlined_call_operand.hbm [shape: f32[1,1,128], index: 2, kind: output, shape index: {}]  }
   0x1   :  { %8 = vsyncpa [#allocation7], 0 }
   0x2   :  { %9 = vsyncpa [#allocation5], 0  ;;  %s217_s9 = smov [#allocation3]   ;;  %s145_s13 = scalar_lea.hbm %s273_s0, 256 }
   0x3   :  { %s21_s10 = sshll.u32 %s217_s9, 4  ;;  %p146_p0 = scmp.ne.s32.totalorder %s273_s0, %s145_s13  ;;  %s22_s10 = int_to_ptr.vmem [resolvable:$true] %s21_s10 }
   0x4   :  { %p149_p1 = scmp.lt.u32.totalorder %s145_s13, %s273_s0 }
   0x6   :  { %p151_p2 = pnand %p149_p1, %p146_p0 }
   0x8   :  { %154 = shalt.err (!%p151_p2)
}
   0x9   :  { %s155_s18 = scalar_lea.vmem %s22_s10, 256  ;;  %p160_p4 = scmp.lt.s32.totalorder %s22_s10, %s22_s10 }
   0xa   :  { %p156_p3 = scmp.ne.s32.totalorder %s22_s10, %s155_s18  ;;  %p161_p5 = scmp.lt.s32.totalorder %s155_s18, %s155_s18 }
   0xc   :  { %p162_p6 = por %p161_p5, %p160_p4 }
   0xe   :  { %p163_p7 = pnand %p162_p6, %p156_p3 }
  0x10   :  { %166 = shalt.err (!%p163_p7)
}
  0x11   :  { %s218_s19 = smov 128   ;;  %s219_s20 = smov 8  }
  0x12   :  { %27 = dma.hbm_to_vmem [thread:$0]  %s273_s0, 256, %s22_s10, [#allocation4], %s218_s19, %s218_s19, %s219_s20  }
  0x13   :  { %s220_s23 = smov [#allocation6]   ;;  %s167_s27 = scalar_lea.hbm %s274_s1, 256 }
  0x14   :  { %s39_s24 = sshll.u32 %s220_s23, 4  ;;  %p168_p8 = scmp.ne.s32.totalorder %s274_s1, %s167_s27  ;;  %s40_s24 = int_to_ptr.vmem [resolvable:$true] %s39_s24 }
  0x15   :  { %p171_p9 = scmp.lt.u32.totalorder %s167_s27, %s274_s1 }
  0x17   :  { %p173_p10 = pnand %p171_p9, %p168_p8 }
  0x19   :  { %176 = shalt.err (!%p173_p10)
}
  0x1a   :  { %s177_s4 = scalar_lea.vmem %s40_s24, 256  ;;  %p182_p12 = scmp.lt.s32.totalorder %s40_s24, %s40_s24 }
  0x1b   :  { %p178_p11 = scmp.ne.s32.totalorder %s40_s24, %s177_s4  ;;  %p183_p13 = scmp.lt.s32.totalorder %s177_s4, %s177_s4 }
  0x1d   :  { %p184_p0 = por %p183_p13, %p182_p12 }
  0x1f   :  { %p185_p1 = pnand %p184_p0, %p178_p11 }
  0x21   :  { %188 = shalt.err (!%p185_p1)
}
  0x22   :  { %45 = dma.hbm_to_vmem [thread:$0]  %s274_s1, 256, %s40_s24, [#allocation7], %s218_s19, %s218_s19, %s219_s20  }
  0x23   :  { %211 = dma.done.wait [#allocation4], 256  }
  0x24   :  { %212 = vsyncadd [#allocation4], 4294967040 }
  0x25   :  { %213 = dma.done.wait [#allocation7], 256  }
  0x26   :  { %214 = vsyncadd [#allocation7], 4294967040  ;;  %v66_v0 = vld [vmem:[#allocation3] sm:$0xff]  ;;  %v67_v1 = vld [vmem:[#allocation3 + $0x8] sm:$0xff]  ;;  %s221_s6 = smov [#allocation8]  }
  0x27   :  { %v68_v2 = vld [vmem:[#allocation6] sm:$0xff]  ;;  %v69_v3 = vld [vmem:[#allocation6 + $0x8] sm:$0xff]  ;;  %s126_s7 = sshll.u32 %s221_s6, 4  ;;  %s127_s7 = int_to_ptr.vmem [resolvable:$true] %s126_s7 }
  0x28   :  { %v70_v4 = vsub.f32 %v66_v0, %v68_v2  ;;  %v71_v5 = vsub.f32 %v67_v1, %v69_v3  ;;  %s189_s1 = scalar_lea.vmem %s127_s7, 16  ;;  %s193_s8 = scalar_lea.vmem %s127_s7, 32 }
  0x29   :  { %p190_p2 = scmp.ne.s32.totalorder %s127_s7, %s189_s1  ;;  %p194_p3 = scmp.lt.s32.totalorder %s127_s7, %s127_s7 }
  0x2a   :  { %v72_v6 = vand.u32 2147483647, %v70_v4  ;;  %v73_v7 = vand.u32 2147483647, %v71_v5  ;;  %p195_p4 = scmp.lt.s32.totalorder %s193_s8, %s189_s1 }
  0x2c   :  { %v112_v8 = vadd.f32 %v73_v7, %v72_v6  ;;  %p196_p5 = por %p195_p4, %p194_p3 }
  0x2e   :  { %v113_v9 = vrot.slane %v112_v8, 4  ;;  %p197_p6 = pnand %p196_p5, %p190_p2 }
  0x30   :  { %v114_v10 = vadd.f32 %v113_v9, %v112_v8 }
  0x32   :  { %v115_v11 = vrot.slane %v114_v10, 2 }
  0x34   :  { %v116_v12 = vadd.f32 %v115_v11, %v114_v10 }
  0x36   :  { %v117_v13 = vrot.slane %v116_v12, 1 }
  0x38   :  { %v118_v14 = vadd.f32 %v117_v13, %v116_v12 }
  0x3a   :  { %119 = vst [vmem:[#allocation8] sm:$0x1] %v118_v14 }
  0x3b   :  { %200 = shalt.err (!%p197_p6)
}
  0x3c   :  { %s201_s11 = scalar_lea.hbm %s275_s2, 16 }
  0x3d   :  { %p202_p7 = scmp.ne.s32.totalorder %s275_s2, %s201_s11  ;;  %p205_p8 = scmp.lt.u32.totalorder %s201_s11, %s275_s2 }
  0x3f   :  { %p207_p9 = pnand %p205_p8, %p202_p7 }
  0x41   :  { %210 = shalt.err (!%p207_p9)
}
  0x42   :  { %129 = dma.vmem_to_hbm [thread:$0]  %s127_s7, 16, %s275_s2, [#allocation5]  }
  0x43   :  { %215 = dma.done.wait [#allocation5], 16  }
  0x44   :  { %216 = vsyncadd [#allocation5], 4294967280 }
  0x45   :  { %133 = vsyncpa [#allocation4], 1 }
  0x46   :  { %134 = vsyncpa [#allocation7], 1 }
  0x47   :  { %135 = vsyncpa [#allocation5], 1 }

</bundles_post_ra>
